<compile_context>
chip_gen: v7x
topology: tpu7x:2x2x1
jax: 0.10.0
libtpu: 0.0.40
codegen_flags: <defaults>
</compile_context>

<pallas_src>
import jax
import jax.numpy as jnp
from jax import lax
from jax.experimental import pallas as pl
from jax.experimental.pallas import tpu as pltpu

LANES = 128
ROW_TILE = 8                 # f32 sublane tile
MAX_BLOCK_ROWS = 4096        # 4096 x 128 x 4B = 2 MiB per f32 input tile
CHUNK_ROWS = 512             # inner-loop chunk: 512 x 128 x 4B = 256 KiB temporaries


def _default_num_splits():
    # The split axis only helps on chips with two TensorCores (v7x); on 1-TC
    # chips (v5e/v6e) it is just a serial loop plus a possibly wasted step.
    # TODO(synk): verify via xprof that "parallel" really shards the split axis
    # across both v7x TensorCores; if not, switch it to pltpu.CORE_PARALLEL.
    try:
        kind = jax.devices()[0].device_kind.lower()
    except Exception:
        return 1
    return 2 if "v7" in kind else 1


def _make_kernel(rows, block_rows, chunk_rows, blocks_per_split, total_blocks,
                 num_splits, assume_binary_targets):
    chunks_per_block = block_rows // chunk_rows
    sub_tiles = chunk_rows // ROW_TILE
    last_block_is_partial = total_blocks * block_rows > rows
    has_clamped_steps = blocks_per_split * num_splits > total_blocks

    def tile_sum(v):
        # (chunk_rows, 128) -> (8, 128): cross-vreg VPU adds only, no XLU.
        return jnp.sum(v.reshape(sub_tiles, ROW_TILE, LANES), axis=0)

    def kernel(x_ref, t_ref, out_ref):
        s = pl.program_id(0)     # parallel split (TensorCore shard on v7x)
        j = pl.program_id(1)     # sequential reduction step within the split

        @pl.when(j == 0)
        def _():
            out_ref[...] = jnp.zeros_like(out_ref)

        logical_block = s * blocks_per_split + j
        row_start = logical_block * block_rows

        def chunk_body(c, carry, masked):
            acc_it, acc_xpt, acc_bce = carry
            r0 = pl.multiple_of(c * chunk_rows, ROW_TILE)
            x = x_ref[pl.ds(r0, chunk_rows), :].astype(jnp.float32)
            t = t_ref[pl.ds(r0, chunk_rows), :].astype(jnp.float32)
            if masked:
                # Zero rows past the end of the array BEFORE any arithmetic so
                # garbage in the clipped edge-block DMA window (possibly NaN
                # bit patterns) can never reach the sums.
                row_ids = lax.broadcasted_iota(jnp.int32, (chunk_rows, LANES), 0)
                valid = (row_start + r0 + row_ids) < rows
                x = jnp.where(valid, x, 0.0)
                t = jnp.where(valid, t, 0.0)
            if assume_binary_targets:
                # Single-log path, exact for t in {0, 1}:
                #   t*log(x) + (1-t)*log(1-x) == log(where(t>=0.5, x, 1-x))
                bce_pos = jnp.maximum(jnp.log(jnp.where(t >= 0.5, x, 1.0 - x)), -100.0)
            else:
                # torch.F.binary_cross_entropy clamps log at -100.  The clamp
                # must stay BEFORE the multiply so masked/padded (x=0, t=0)
                # elements contribute exactly 0 (0 * -inf would be NaN).
                log_p = jnp.maximum(jnp.log(x), -100.0)
                log_1mp = jnp.maximum(jnp.log(1.0 - x), -100.0)
                bce_pos = log_1mp + t * (log_p - log_1mp)
            return (acc_it + tile_sum(x * t),      # intersection
                    acc_xpt + tile_sum(x + t),     # sum(inputs) + sum(targets)
                    acc_bce + tile_sum(bce_pos))   # +BCE (negated in epilogue)

        def run_block(masked):
            zero = jnp.zeros((ROW_TILE, LANES), jnp.float32)
            acc = lax.fori_loop(0, chunks_per_block,
                                lambda c, carry: chunk_body(c, carry, masked),
                                (zero, zero, zero))
            out_ref[0, 0] += acc[0]
            out_ref[0, 1] += acc[1]
            out_ref[0, 2] += acc[2]

        def dispatch_block():
            if not last_block_is_partial:
                run_block(False)                       # every block is full
            else:
                needs_mask = row_start + block_rows > rows

                @pl.when(jnp.logical_not(needs_mask))  # hot path: no mask
                def _():
                    run_block(False)

                @pl.when(needs_mask)                   # cold path: boundary block
                def _():
                    run_block(True)

        if has_clamped_steps:
            # Over-provisioned trailing steps of a split: skip all compute.
            @pl.when(logical_block < total_blocks)
            def _():
                dispatch_block()
        else:
            dispatch_block()

    return kernel


def dice_bce_loss(inputs, targets, smooth=1.0, assume_binary_targets=False,
                  num_splits=None):
    """Pallas implementation of DiceBCELoss.forward (inputs are probabilities)."""
    x = jnp.reshape(inputs, (-1,))
    t = jnp.reshape(targets, (-1,))
    n = x.shape[0]

    # Align to a multiple of 8*128 so the lane-dense reshape is exact.  Zero
    # padding contributes 0 to every reduction (clamped logs); this is a no-op
    # for already-aligned inputs (the common NCHW case).
    # TODO(synk): handle a ragged tail fully in-kernel (lane mask in the cold
    # boundary branch) to avoid the pad copy for misaligned N.
    tile_elems = ROW_TILE * LANES
    n_pad = pl.cdiv(n, tile_elems) * tile_elems
    if n_pad != n:
        x = jnp.pad(x, (0, n_pad - n))
        t = jnp.pad(t, (0, n_pad - n))

    rows = n_pad // LANES
    x2 = x.reshape(rows, LANES)
    t2 = t.reshape(rows, LANES)

    # Bigger blocks for narrower dtypes keep per-step DMA bytes well above the
    # ~0.35us fixed grid-step overhead (2 MiB/stream at native width).
    max_itemsize = max(x2.dtype.itemsize, t2.dtype.itemsize)
    cap = MAX_BLOCK_ROWS * max(1, 4 // max(1, max_itemsize))

    chunk_rows = min(CHUNK_ROWS, rows)
    block_rows = min(cap, max(chunk_rows, (rows // chunk_rows) * chunk_rows))
    total_blocks = pl.cdiv(rows, block_rows)

    if num_splits is None:
        num_splits = _default_num_splits()
    num_splits = max(1, min(num_splits, total_blocks))
    blocks_per_split = pl.cdiv(total_blocks, num_splits)

    if blocks_per_split * num_splits > total_blocks:
        def in_map(s, j):
            # Clamp over-provisioned trailing steps onto the last real block;
            # their compute is skipped in-kernel.
            return (jnp.minimum(s * blocks_per_split + j, total_blocks - 1), 0)
    else:
        def in_map(s, j):
            return (s * blocks_per_split + j, 0)

    partials = pl.pallas_call(
        _make_kernel(rows, block_rows, chunk_rows, blocks_per_split,
                     total_blocks, num_splits, assume_binary_targets),
        out_shape=jax.ShapeDtypeStruct((num_splits, 3, ROW_TILE, LANES), jnp.float32),
        grid_spec=pltpu.PrefetchScalarGridSpec(
            num_scalar_prefetch=0,
            grid=(num_splits, blocks_per_split),
            in_specs=[
                pl.BlockSpec((block_rows, LANES), in_map),
                pl.BlockSpec((block_rows, LANES), in_map),
            ],
            out_specs=pl.BlockSpec((1, 3, ROW_TILE, LANES),
                                   lambda s, j: (s, 0, 0, 0)),
        ),
        compiler_params=pltpu.CompilerParams(
            dimension_semantics=("parallel", "arbitrary"),
        ),
    )(x2, t2)

    # Tiny epilogue: cross-lane reduce of (splits, 3, 8, 128) + scalar math.
    sums = jnp.sum(partials, axis=(0, 2, 3))
    intersection, sum_xt, bce_pos_sum = sums[0], sums[1], sums[2]
    dice_loss = 1.0 - (2.0 * intersection + smooth) / (sum_xt + smooth)
    bce_mean = -bce_pos_sum / n          # negation hoisted out of the kernel
    return bce_mean + dice_loss


def _reference(inputs, targets, smooth=1.0):
    x = jnp.reshape(inputs, (-1,)).astype(jnp.float32)
    t = jnp.reshape(targets, (-1,)).astype(jnp.float32)
    intersection = jnp.sum(x * t)
    dice_loss = 1.0 - (2.0 * intersection + smooth) / (jnp.sum(x) + jnp.sum(t) + smooth)
    log_p = jnp.maximum(jnp.log(x), -100.0)
    log_1mp = jnp.maximum(jnp.log(1.0 - x), -100.0)
    bce = jnp.mean(-(t * log_p + (1.0 - t) * log_1mp))
    return bce + dice_loss


def _make_case(key, shape):
    k1, k2 = jax.random.split(key)
    logits = jax.random.normal(k1, shape, dtype=jnp.float32)
    probs = jax.nn.sigmoid(logits)                        # probabilities in (0, 1)
    tgts = jax.random.bernoulli(k2, 0.5, shape).astype(jnp.float32)
    return probs, tgts


if __name__ == "__main__":
    key = jax.random.PRNGKey(0)
    k_main, k_b, k_c = jax.random.split(key, 3)

    # Primary case: segmentation-head-like NCHW [2, 4, 16, 16].
    inputs, targets = _make_case(k_main, (2, 4, 16, 16))
    loss = jax.block_until_ready(dice_bce_loss(inputs, targets, smooth=1.0))
    ref = jax.block_until_ready(_reference(inputs, targets, smooth=1.0))
    assert jnp.allclose(loss, ref, atol=1e-5, rtol=1e-5), (loss, ref)

    # Extra validation: multi-block grid + partial (masked) boundary block +
    # multi-chunk inner loop.
    xb, tb = _make_case(k_b, (2, 4, 128, 130))
    lb = jax.block_until_ready(dice_bce_loss(xb, tb, smooth=1.0))
    rb = jax.block_until_ready(_reference(xb, tb, smooth=1.0))
    assert jnp.allclose(lb, rb, atol=1e-5, rtol=1e-5), (lb, rb)

    # Extra validation: misaligned N exercising the zero-pad path.
    xc, tc = _make_case(k_c, (3, 3, 10, 10))
    lc = jax.block_until_ready(dice_bce_loss(xc, tc, smooth=1.0))
    rc = jax.block_until_ready(_reference(xc, tc, smooth=1.0))
    assert jnp.allclose(lc, rc, atol=1e-5, rtol=1e-5), (lc, rc)

    print("KERNEL_OK")
</pallas_src>

<mosaic_0001>
module attributes {stable_mosaic.version = 11 : i64} {
  func.func @kernel(%arg0: i32, %arg1: i32, %arg2: memref<16x128xf32, #tpu.memory_space<vmem>>, %arg3: memref<16x128xf32, #tpu.memory_space<vmem>>, %arg4: memref<1x3x8x128xf32, #tpu.memory_space<vmem>>) attributes {dimension_semantics = [#tpu.dimension_semantics<parallel>, #tpu.dimension_semantics<arbitrary>], iteration_bounds = array<i64: 1, 1>, scalar_prefetch = 0 : i64, scratch_operands = 0 : i64, tpu.core_type = #tpu.core_type<tc>, window_params = [{transform_indices = @transform_0, window_bounds = array<i64: 16, 128>}, {transform_indices = @transform_1, window_bounds = array<i64: 16, 128>}, {transform_indices = @transform_2, window_bounds = array<i64: 1, 3, 8, 128>}]} {
    %c0_i32 = arith.constant 0 : i32
    %0 = arith.cmpi eq, %arg1, %c0_i32 : i32
    %1 = arith.extui %0 : i1 to i32
    %c0_i32_0 = arith.constant 0 : i32
    %2 = arith.cmpi ne, %1, %c0_i32_0 : i32
    scf.if %2 {
      %cst_31 = arith.constant 0.000000e+00 : f32
      %50 = vector.broadcast %cst_31 : f32 to vector<1x3x8x128xf32>
      %c0_32 = arith.constant 0 : index
      %c0_33 = arith.constant 0 : index
      %c0_34 = arith.constant 0 : index
      %c0_35 = arith.constant 0 : index
      %51 = vector.load %arg4[%c0_32, %c0_33, %c0_34, %c0_35] : memref<1x3x8x128xf32, #tpu.memory_space<vmem>>, vector<1x3x8x128xf32>
      tpu.vector_store %arg4[%c0_32, %c0_33, %c0_34, %c0_35], %50 {strides = array<i32>} : memref<1x3x8x128xf32, #tpu.memory_space<vmem>>, vector<1x3x8x128xf32>,
    } else {
    }
    %cst = arith.constant 0.000000e+00 : f32
    %3 = vector.broadcast %cst : f32 to vector<8x128xf32>
    %c0_i32_1 = arith.constant 0 : i32
    %c16_i32 = arith.constant 16 : i32
    %4 = arith.muli %c0_i32_1, %c16_i32 : i32
    %5 = tpu.assume_multiple %4, 8 : i32
    %6 = arith.index_cast %5 : i32 to index
    %c0 = arith.constant 0 : index
    %7 = vector.load %arg2[%6, %c0] : memref<16x128xf32, #tpu.memory_space<vmem>>, vector<16x128xf32>
    %8 = arith.index_cast %5 : i32 to index
    %c0_2 = arith.constant 0 : index
    %9 = vector.load %arg3[%8, %c0_2] : memref<16x128xf32, #tpu.memory_space<vmem>>, vector<16x128xf32>
    %10 = math.log %7 : vector<16x128xf32>
    %cst_3 = arith.constant -1.000000e+02 : f32
    %11 = vector.broadcast %cst_3 : f32 to vector<16x128xf32>
    %12 = arith.maximumf %10, %11 : vector<16x128xf32>
    %cst_4 = arith.constant 1.000000e+00 : f32
    %13 = vector.broadcast %cst_4 : f32 to vector<16x128xf32>
    %14 = arith.subf %13, %7 : vector<16x128xf32>
    %15 = math.log %14 : vector<16x128xf32>
    %cst_5 = arith.constant -1.000000e+02 : f32
    %16 = vector.broadcast %cst_5 : f32 to vector<16x128xf32>
    %17 = arith.maximumf %15, %16 : vector<16x128xf32>
    %18 = arith.subf %12, %17 : vector<16x128xf32>
    %19 = arith.mulf %9, %18 : vector<16x128xf32>
    %20 = arith.addf %17, %19 : vector<16x128xf32>
    %21 = arith.mulf %7, %9 : vector<16x128xf32>
    %22 = vector.shape_cast %21 : vector<16x128xf32> to vector<2x8x128xf32>
    %cst_6 = arith.constant dense<0.000000e+00> : vector<8x128xf32>
    %23 = vector.multi_reduction <add>, %22, %cst_6 [0] : vector<2x8x128xf32> to vector<8x128xf32>
    %24 = arith.addf %3, %23 : vector<8x128xf32>
    %25 = arith.addf %7, %9 : vector<16x128xf32>
    %26 = vector.shape_cast %25 : vector<16x128xf32> to vector<2x8x128xf32>
    %cst_7 = arith.constant dense<0.000000e+00> : vector<8x128xf32>
    %27 = vector.multi_reduction <add>, %26, %cst_7 [0] : vector<2x8x128xf32> to vector<8x128xf32>
    %28 = arith.addf %3, %27 : vector<8x128xf32>
    %29 = vector.shape_cast %20 : vector<16x128xf32> to vector<2x8x128xf32>
    %cst_8 = arith.constant dense<0.000000e+00> : vector<8x128xf32>
    %30 = vector.multi_reduction <add>, %29, %cst_8 [0] : vector<2x8x128xf32> to vector<8x128xf32>
    %31 = arith.addf %3, %30 : vector<8x128xf32>
    %c1_i32 = arith.constant 1 : i32
    %c0_9 = arith.constant 0 : index
    %c0_10 = arith.constant 0 : index
    %c0_11 = arith.constant 0 : index
    %c0_12 = arith.constant 0 : index
    %32 = vector.load %arg4[%c0_9, %c0_10, %c0_11, %c0_12] : memref<1x3x8x128xf32, #tpu.memory_space<vmem>>, vector<1x1x8x128xf32>
    %33 = vector.shape_cast %32 : vector<1x1x8x128xf32> to vector<8x128xf32>
    %34 = arith.addf %33, %24 : vector<8x128xf32>
    %c0_13 = arith.constant 0 : index
    %c0_14 = arith.constant 0 : index
    %c0_15 = arith.constant 0 : index
    %c0_16 = arith.constant 0 : index
    %35 = vector.load %arg4[%c0_13, %c0_14, %c0_15, %c0_16] : memref<1x3x8x128xf32, #tpu.memory_space<vmem>>, vector<1x1x8x128xf32>
    %36 = vector.shape_cast %35 : vector<1x1x8x128xf32> to vector<8x128xf32>
    %37 = vector.shape_cast %34 : vector<8x128xf32> to vector<1x1x8x128xf32>
    tpu.vector_store %arg4[%c0_13, %c0_14, %c0_15, %c0_16], %37 {strides = array<i32>} : memref<1x3x8x128xf32, #tpu.memory_space<vmem>>, vector<1x1x8x128xf32>,
    %c0_17 = arith.constant 0 : index
    %c1 = arith.constant 1 : index
    %c0_18 = arith.constant 0 : index
    %c0_19 = arith.constant 0 : index
    %38 = vector.load %arg4[%c0_17, %c1, %c0_18, %c0_19] : memref<1x3x8x128xf32, #tpu.memory_space<vmem>>, vector<1x1x8x128xf32>
    %39 = vector.shape_cast %38 : vector<1x1x8x128xf32> to vector<8x128xf32>
    %40 = arith.addf %39, %28 : vector<8x128xf32>
    %c0_20 = arith.constant 0 : index
    %c1_21 = arith.constant 1 : index
    %c0_22 = arith.constant 0 : index
    %c0_23 = arith.constant 0 : index
    %41 = vector.load %arg4[%c0_20, %c1_21, %c0_22, %c0_23] : memref<1x3x8x128xf32, #tpu.memory_space<vmem>>, vector<1x1x8x128xf32>
    %42 = vector.shape_cast %41 : vector<1x1x8x128xf32> to vector<8x128xf32>
    %43 = vector.shape_cast %40 : vector<8x128xf32> to vector<1x1x8x128xf32>
    tpu.vector_store %arg4[%c0_20, %c1_21, %c0_22, %c0_23], %43 {strides = array<i32>} : memref<1x3x8x128xf32, #tpu.memory_space<vmem>>, vector<1x1x8x128xf32>,
    %c0_24 = arith.constant 0 : index
    %c2 = arith.constant 2 : index
    %c0_25 = arith.constant 0 : index
    %c0_26 = arith.constant 0 : index
    %44 = vector.load %arg4[%c0_24, %c2, %c0_25, %c0_26] : memref<1x3x8x128xf32, #tpu.memory_space<vmem>>, vector<1x1x8x128xf32>
    %45 = vector.shape_cast %44 : vector<1x1x8x128xf32> to vector<8x128xf32>
    %46 = arith.addf %45, %31 : vector<8x128xf32>
    %c0_27 = arith.constant 0 : index
    %c2_28 = arith.constant 2 : index
    %c0_29 = arith.constant 0 : index
    %c0_30 = arith.constant 0 : index
    %47 = vector.load %arg4[%c0_27, %c2_28, %c0_29, %c0_30] : memref<1x3x8x128xf32, #tpu.memory_space<vmem>>, vector<1x1x8x128xf32>
    %48 = vector.shape_cast %47 : vector<1x1x8x128xf32> to vector<8x128xf32>
    %49 = vector.shape_cast %46 : vector<8x128xf32> to vector<1x1x8x128xf32>
    tpu.vector_store %arg4[%c0_27, %c2_28, %c0_29, %c0_30], %49 {strides = array<i32>} : memref<1x3x8x128xf32, #tpu.memory_space<vmem>>, vector<1x1x8x128xf32>,
    return
  }
  func.func @transform_0(%arg0: i32, %arg1: i32) -> (i32, i32) {
    %c1_i32 = arith.constant 1 : i32
    %0 = arith.muli %arg0, %c1_i32 : i32
    %1 = arith.addi %0, %arg1 : i32
    %c0_i32 = arith.constant 0 : i32
    %c0_i32_0 = arith.constant 0 : i32
    return %1, %c0_i32 : i32, i32
  }
  func.func @transform_1(%arg0: i32, %arg1: i32) -> (i32, i32) {
    %c1_i32 = arith.constant 1 : i32
    %0 = arith.muli %arg0, %c1_i32 : i32
    %1 = arith.addi %0, %arg1 : i32
    %c0_i32 = arith.constant 0 : i32
    %c0_i32_0 = arith.constant 0 : i32
    return %1, %c0_i32 : i32, i32
  }
  func.func @transform_2(%arg0: i32, %arg1: i32) -> (i32, i32, i32, i32) {
    %c0_i32 = arith.constant 0 : i32
    %c0_i32_0 = arith.constant 0 : i32
    %c0_i32_1 = arith.constant 0 : i32
    %c0_i32_2 = arith.constant 0 : i32
    return %arg0, %c0_i32, %c0_i32_0, %c0_i32_1 : i32, i32, i32, i32
  }
}

</mosaic_0001>

<bundles_post_ra>
// kernel: tpu_custom_call.1
= control target key start
LH: loop header
LB: loop body
LE: loop exit
PB: predicated region body
PF: predicated region fallthrough
CT: control target
= control target key end

     0   :  { %7 = vsyncpa [#allocation3], 0  ;;  %s273_s0 = inlined_call_operand.hbm [shape: f32[16,128], index: 0, kind: input, shape index: {}]   ;;  %s274_s1 = inlined_call_operand.hbm [shape: f32[16,128], index: 1, kind: input, shape index: {}]   ;;  %s275_s2 = inlined_call_operand.hbm [shape: f32[1,3,8,128], index: 2, kind: output, shape index: {}]  }
   0x1   :  { %8 = vsyncpa [#allocation6], 0 }
   0x2   :  { %9 = vsyncpa [#allocation4], 0  ;;  %s208_s9 = smov [#allocation2]   ;;  %s136_s13 = scalar_lea.hbm %s273_s0, 256 }
   0x3   :  { %s19_s10 = sshll.u32 %s208_s9, 4  ;;  %p137_p0 = scmp.ne.s32.totalorder %s273_s0, %s136_s13  ;;  %s20_s10 = int_to_ptr.vmem [resolvable:$true] %s19_s10 }
   0x4   :  { %p140_p1 = scmp.lt.u32.totalorder %s136_s13, %s273_s0 }
   0x6   :  { %p142_p2 = pnand %p140_p1, %p137_p0 }
   0x8   :  { %145 = shalt.err (!%p142_p2)
}
   0x9   :  { %s146_s18 = scalar_lea.vmem %s20_s10, 256  ;;  %p151_p4 = scmp.lt.s32.totalorder %s20_s10, %s20_s10 }
   0xa   :  { %p147_p3 = scmp.ne.s32.totalorder %s20_s10, %s146_s18  ;;  %p152_p5 = scmp.lt.s32.totalorder %s146_s18, %s146_s18 }
   0xc   :  { %p153_p6 = por %p152_p5, %p151_p4 }
   0xe   :  { %p154_p7 = pnand %p153_p6, %p147_p3 }
  0x10   :  { %157 = shalt.err (!%p154_p7)
}
  0x11   :  { %s209_s19 = smov 128   ;;  %s210_s20 = smov 8  }
  0x12   :  { %25 = dma.hbm_to_vmem [thread:$0]  %s273_s0, 256, %s20_s10, [#allocation3], %s209_s19, %s209_s19, %s210_s20  }
  0x13   :  { %s211_s23 = smov [#allocation5]   ;;  %s158_s27 = scalar_lea.hbm %s274_s1, 256 }
  0x14   :  { %s35_s24 = sshll.u32 %s211_s23, 4  ;;  %p159_p8 = scmp.ne.s32.totalorder %s274_s1, %s158_s27  ;;  %s36_s24 = int_to_ptr.vmem [resolvable:$true] %s35_s24 }
  0x15   :  { %p162_p9 = scmp.lt.u32.totalorder %s158_s27, %s274_s1 }
  0x17   :  { %p164_p10 = pnand %p162_p9, %p159_p8 }
  0x19   :  { %167 = shalt.err (!%p164_p10)
}
  0x1a   :  { %s168_s4 = scalar_lea.vmem %s36_s24, 256  ;;  %p173_p12 = scmp.lt.s32.totalorder %s36_s24, %s36_s24 }
  0x1b   :  { %p169_p11 = scmp.ne.s32.totalorder %s36_s24, %s168_s4  ;;  %p174_p13 = scmp.lt.s32.totalorder %s168_s4, %s168_s4 }
  0x1d   :  { %p175_p0 = por %p174_p13, %p173_p12 }
  0x1f   :  { %p176_p1 = pnand %p175_p0, %p169_p11 }
  0x21   :  { %179 = shalt.err (!%p176_p1)
}
  0x22   :  { %41 = dma.hbm_to_vmem [thread:$0]  %s274_s1, 256, %s36_s24, [#allocation6], %s209_s19, %s209_s19, %s210_s20  }
  0x23   :  { %202 = dma.done.wait [#allocation3], 256  }
  0x24   :  { %203 = vsyncadd [#allocation3], 4294967040 }
  0x25   :  { %204 = dma.done.wait [#allocation6], 256  }
  0x26   :  { %205 = vsyncadd [#allocation6], 4294967040  ;;  %v59_v0 = vld [vmem:[#allocation2] sm:$0xff]  ;;  %v60_v1 = vld [vmem:[#allocation2 + $0x8] sm:$0xff]  ;;  %s212_s1 = smov [#allocation7]  }
  0x27   :  { %v61_v2 = vld [vmem:[#allocation5] sm:$0xff]  ;;  %v62_v3 = vld [vmem:[#allocation5 + $0x8] sm:$0xff]  ;;  %128 = vlog2.f32 %v59_v0  ;;  %v69_v6 = vsub.f32 1.0, %v59_v0  ;;  %v70_v9 = vsub.f32 1.0, %v60_v1  ;;  %s109_s6 = sshll.u32 %s212_s1, 4  ;;  %s110_s6 = int_to_ptr.vmem [resolvable:$true] %s109_s6 }
  0x28   :  { %v83_v4 = vmul.f32 %v61_v2, %v59_v0  ;;  %v87_v5 = vadd.f32 %v61_v2, %v59_v0  ;;  %130 = vlog2.f32 %v60_v1  ;;  %v84_v7 = vmul.f32 %v62_v3, %v60_v1  ;;  %s180_s7 = scalar_lea.vmem %s110_s6, 384  ;;  %p185_p3 = scmp.lt.s32.totalorder %s110_s6, %s110_s6 }
  0x29   :  { %v88_v8 = vadd.f32 %v62_v3, %v60_v1  ;;  %132 = vlog2.f32 %v69_v6  ;;  %p181_p2 = scmp.ne.s32.totalorder %s110_s6, %s180_s7  ;;  %p186_p4 = scmp.lt.s32.totalorder %s180_s7, %s180_s7 }
  0x2a   :  { %v85_v10 = vadd.f32 %v84_v7, %v83_v4  ;;  %134 = vlog2.f32 %v70_v9 }
  0x2b   :  { %v89_v11 = vadd.f32 %v88_v8, %v87_v5  ;;  %p187_p5 = por %p186_p4, %p185_p3 }
  0x2c   :  { %95 = vst [vmem:[#allocation7] sm:$0xff] %v85_v10 }
  0x2d   :  { %99 = vst [vmem:[#allocation7 + $0x8] sm:$0xff] %v89_v11  ;;  %p188_p6 = pnand %p187_p5, %p181_p2 }
  0x31   :  { %v129_v12 = vpop.eup %128 }
  0x32   :  { %v131_v13 = vpop.eup %130  ;;  %v64_v14 = vmul.f32 0.6931472, %v129_v12 }
  0x33   :  { %v133_v15 = vpop.eup %132  ;;  %v66_v16 = vmul.f32 0.6931472, %v131_v13 }
  0x34   :  { %v135_v17 = vpop.eup %134  ;;  %v67_v18 = vmax.f32 %v64_v14, -100.0  ;;  %v72_v19 = vmul.f32 0.6931472, %v133_v15 }
  0x35   :  { %v68_v20 = vmax.f32 %v66_v16, -100.0  ;;  %v74_v21 = vmul.f32 0.6931472, %v135_v17 }
  0x36   :  { %v75_v22 = vmax.f32 %v72_v19, -100.0 }
  0x37   :  { %v76_v23 = vmax.f32 %v74_v21, -100.0 }
  0x38   :  { %v77_v24 = vsub.f32 %v67_v18, %v75_v22 }
  0x39   :  { %v78_v25 = vsub.f32 %v68_v20, %v76_v23 }
  0x3a   :  { %v79_v26 = vmul.f32 %v77_v24, %v61_v2 }
  0x3b   :  { %v80_v27 = vmul.f32 %v78_v25, %v62_v3 }
  0x3c   :  { %v81_v28 = vadd.f32 %v79_v26, %v75_v22 }
  0x3d   :  { %v82_v29 = vadd.f32 %v80_v27, %v76_v23 }
  0x3f   :  { %v91_v30 = vadd.f32 %v82_v29, %v81_v28 }
  0x41   :  { %103 = vst [vmem:[#allocation7 + $0x10] sm:$0xff] %v91_v30 }
  0x42   :  { %191 = shalt.err (!%p188_p6)
}
  0x43   :  { %s192_s10 = scalar_lea.hbm %s275_s2, 384 }
  0x44   :  { %p193_p7 = scmp.ne.s32.totalorder %s275_s2, %s192_s10  ;;  %p196_p8 = scmp.lt.u32.totalorder %s192_s10, %s275_s2 }
  0x46   :  { %p198_p9 = pnand %p196_p8, %p193_p7 }
  0x48   :  { %201 = shalt.err (!%p198_p9)
}
  0x49   :  { %115 = dma.vmem_to_hbm [thread:$0]  %s110_s6, 384, %s275_s2, [#allocation4], %s209_s19, %s209_s19, %s210_s20  }
  0x4a   :  { %206 = dma.done.wait [#allocation4], 384  }
  0x4b   :  { %207 = vsyncadd [#allocation4], 4294966912 }
  0x4c   :  { %119 = vsyncpa [#allocation3], 1 }
  0x4d   :  { %120 = vsyncpa [#allocation6], 1 }
  0x4e   :  { %121 = vsyncpa [#allocation4], 1 }

</bundles_post_ra>
